<compile_context>
chip_gen: v5e
topology: v5e:2x2
jax: 0.10.0
libtpu: 0.0.40
codegen_flags: <defaults>
</compile_context>

<pallas_src>
import functools

import jax
import jax.numpy as jnp
from jax.experimental import pallas as pl
from jax.experimental.pallas import tpu as pltpu


def _round_up(x, m):
    return ((x + m - 1) // m) * m


def _cdiv(a, b):
    return (a + b - 1) // b


_SQRT_2_OVER_PI = 0.7978845608028654


def _gelu_tanh(x):
    # tanh-approx GELU: heavy transcendental goes to the EUP slot.
    return 0.5 * x * (1.0 + jnp.tanh(_SQRT_2_OVER_PI * (x + 0.044715 * x * x * x)))


# ---------------------------------------------------------------------------
# Fused Pallas kernel
# ---------------------------------------------------------------------------

def _branch_convt1_ln_gelu(x, w1, b1, gamma, beta, cmid, compute_dtype):
    """ConvT1 (all 4 sub-pixel groups fused into ONE matmul) + LayerNorm2d + GELU.

    x     : (tm, Cin)       matmul dtype (f32 or bf16)
    w1    : (Cin, 4*cmid)   columns = g1*cmid + cm,  g1 = di1*2 + dj1
    b1    : (1, 4*cmid) f32 (per-channel bias tiled over the 4 groups)
    gamma, beta : (1, cmid) f32
    Returns a list of 4 (tm, cmid) arrays in `compute_dtype`, one per g1.
    """
    h = jnp.dot(x, w1, preferred_element_type=jnp.float32) + b1      # (tm, 4*cmid) f32
    ys = []
    for g in range(4):
        hg = h[:, g * cmid:(g + 1) * cmid]
        mu = jnp.mean(hg, axis=-1, keepdims=True)
        hc = hg - mu
        var = jnp.mean(hc * hc, axis=-1, keepdims=True)
        yg = hc * jax.lax.rsqrt(var + 1e-6) * gamma + beta
        ys.append(_gelu_tanh(yg).astype(compute_dtype))
    return ys


def _fused_decoder_kernel(enc_ref, s0_ref, s1_ref, s2_ref,
                          w1e_ref, b1e_ref, ge_ref, be_ref,
                          w1s_ref, b1s_ref, gs_ref, bs_ref,
                          w2c_ref, b2c_ref, o_ref,
                          *, cme, cms, compute_dtype):
    # ConvT1 + LN + GELU for the 3 decoder bridges (stacked weights) and the
    # embedding decoder; intermediates stay resident in VMEM/registers.
    skip_refs = (s0_ref, s1_ref, s2_ref)
    ys_b = []
    for k in range(3):
        ys_b.append(_branch_convt1_ln_gelu(
            skip_refs[k][...], w1s_ref[k], b1s_ref[k], gs_ref[k], bs_ref[k],
            cms, compute_dtype))
    ys_e = _branch_convt1_ln_gelu(
        enc_ref[...], w1e_ref[...], b1e_ref[...], ge_ref[...], be_ref[...],
        cme, compute_dtype)

    # ConvT2 fused across all 4 branches per sub-pixel group g1: one deep-K
    # matmul + one pre-summed bias (no accumulator RMW across branches).
    outs = []
    for g in range(4):
        ycat = jnp.concatenate([ys_b[0][g], ys_b[1][g], ys_b[2][g], ys_e[g]], axis=-1)
        outs.append(jnp.dot(ycat, w2c_ref[...], preferred_element_type=jnp.float32)
                    + b2c_ref[...])

    # Single lane-dense full-ref store: (tm, 16*Cout), col = g1*4*Cout + g2*Cout + c.
    o_ref[...] = jnp.concatenate(outs, axis=-1).astype(o_ref.dtype)


# ---------------------------------------------------------------------------
# Wrapper: layout plumbing around the single fused pallas_call
# ---------------------------------------------------------------------------

def multi_stream_decoder_fusion(encoded_image, skips, emb_params, bridge_params,
                                *, tm=512, compute_dtype=jnp.float32):
    """Pallas implementation of the explicitly-defined decoder/fusion path:

        unet_fused_feature = embedding_decoder(encoded_image)
                             + sum_k decoder_bridges[k](skip_k)

    encoded_image : (N, bridge_dim, G, G)   f32, NCHW
    skips[k]      : (N, patch_dim, G, G)    f32, NCHW
    returns       : (N, bridge_dim//8, 4G, 4G)  f32, NCHW
    """
    N, C_enc, H, W = encoded_image.shape
    C_skip = skips[0].shape[1]
    Cme = emb_params["w1"].shape[1]           # bridge_dim // 4
    Cms = bridge_params[0]["w1"].shape[1]     # bridge_dim
    Cout = emb_params["w2"].shape[1]          # bridge_dim // 8
    P = N * H * W

    # --- (pixels, channels) rows: ONE entry transpose per input, no stacking ---
    def to_rows(x):
        return jnp.transpose(x, (0, 2, 3, 1)).reshape(-1, x.shape[1]).astype(compute_dtype)

    enc_rows = to_rows(encoded_image)
    skip_rows = [to_rows(s) for s in skips]

    # --- frozen-weight packing ---
    def pack_w1(w):   # torch ConvT weight (Cin, Cmid, 2, 2) -> (Cin, 4*Cmid)
        cin, cmid = w.shape[0], w.shape[1]
        return jnp.transpose(w, (0, 2, 3, 1)).reshape(cin, 4 * cmid).astype(compute_dtype)

    def pack_w2(w):   # (Cmid, Cout, 2, 2) -> (Cmid, 4*Cout)
        return (jnp.transpose(w, (0, 2, 3, 1))
                .reshape(w.shape[0], -1).astype(compute_dtype))

    w1e = pack_w1(emb_params["w1"])                                       # (C_enc, 4*Cme)
    b1e = jnp.tile(emb_params["b1"], 4).reshape(1, 4 * Cme).astype(jnp.float32)
    ge = emb_params["ln_g"].reshape(1, Cme).astype(jnp.float32)
    be = emb_params["ln_b"].reshape(1, Cme).astype(jnp.float32)

    w1s = jnp.stack([pack_w1(p["w1"]) for p in bridge_params], 0)         # (3, C_skip, 4*Cms)
    b1s = jnp.stack([jnp.tile(p["b1"], 4).reshape(1, 4 * Cms)
                     for p in bridge_params], 0).astype(jnp.float32)
    gs = jnp.stack([p["ln_g"].reshape(1, Cms) for p in bridge_params], 0).astype(jnp.float32)
    bs = jnp.stack([p["ln_b"].reshape(1, Cms) for p in bridge_params], 0).astype(jnp.float32)

    # ConvT2 fused across branches; K-concat order = [bridge0 | bridge1 | bridge2 | emb]
    w2c = jnp.concatenate([pack_w2(p["w2"]) for p in bridge_params]
                          + [pack_w2(emb_params["w2"])], axis=0)          # (3*Cms+Cme, 4*Cout)
    b2c = (jnp.tile(emb_params["b2"], 4)
           + sum(jnp.tile(p["b2"], 4) for p in bridge_params)
           ).reshape(1, 4 * Cout).astype(jnp.float32)

    # --- pixel-row tiling: big tiles, but keep grid >= 2 so v7x's 2 TCs share work ---
    tm = min(tm, _round_up(P, 8))
    if P >= 16:
        tm = min(tm, _round_up(_cdiv(P, 2), 8))
    tm = max(tm, 8)
    P_pad = _round_up(P, tm)
    if P_pad != P:
        pad = ((0, P_pad - P), (0, 0))
        enc_rows = jnp.pad(enc_rows, pad)
        skip_rows = [jnp.pad(s, pad) for s in skip_rows]
    grid = (P_pad // tm,)

    def full(a):      # whole-array block, constant index -> fetched once, stays resident
        nd = a.ndim
        return pl.BlockSpec(a.shape, lambda i: (0,) * nd)

    def rows_spec(c):
        return pl.BlockSpec((tm, c), lambda i: (i, 0))

    kernel = functools.partial(_fused_decoder_kernel,
                               cme=Cme, cms=Cms, compute_dtype=compute_dtype)

    out_rows = pl.pallas_call(
        kernel,
        out_shape=jax.ShapeDtypeStruct((P_pad, 16 * Cout), jnp.float32),
        grid=grid,
        in_specs=[
            rows_spec(C_enc), rows_spec(C_skip), rows_spec(C_skip), rows_spec(C_skip),
            full(w1e), full(b1e), full(ge), full(be),
            full(w1s), full(b1s), full(gs), full(bs),
            full(w2c), full(b2c),
        ],
        out_specs=pl.BlockSpec((tm, 16 * Cout), lambda i: (i, 0)),
        compiler_params=pltpu.CompilerParams(
            dimension_semantics=("parallel",),      # shards pixel grid across v7x TCs
            vmem_limit_bytes=32 * 1024 * 1024,      # fits all gens (incl. v7x's 64 MiB)
        ),
    )(enc_rows, *skip_rows, w1e, b1e, ge, be, w1s, b1s, gs, bs, w2c, b2c)

    # --- SINGLE fused 4x4 spatial un-shuffle + NHWC->NCHW permutation ---
    # col = (di1*2+dj1)*4*Cout + (di2*2+dj2)*Cout + c
    out = out_rows[:P].reshape(N, H, W, 2, 2, 2, 2, Cout)
    # (n,h,w,di1,dj1,di2,dj2,c) -> (n,c,h,di1,di2,w,dj1,dj2)
    out = out.transpose(0, 7, 1, 3, 5, 2, 4, 6).reshape(N, Cout, 4 * H, 4 * W)
    return out


# TODO(synk): SAMImageEncoder blocks / positional embedding, SAMPromptEncoder,
#             SAMMaskDecoder, ResNet/VGG aux encoder, Reshaper feature adapters,
#             preprocess() and F.interpolate mask resizing are external modules
#             not defined in this file — not re-implemented here.

# ---------------------------------------------------------------------------
# Pure-JAX reference (correctness check only)
# ---------------------------------------------------------------------------

def _ref_convt2x2(x, w, b):
    N, Cin, H, W = x.shape
    Cout = w.shape[1]
    y = jnp.einsum("nchw,cokl->nohkwl", x, w)          # (N,Cout,H,2,W,2)
    y = y.reshape(N, Cout, 2 * H, 2 * W)
    return y + b[None, :, None, None]


def _ref_ln2d(x, g, b):
    u = x.mean(axis=1, keepdims=True)
    s = ((x - u) ** 2).mean(axis=1, keepdims=True)
    y = (x - u) / jnp.sqrt(s + 1e-6)
    return y * g[None, :, None, None] + b[None, :, None, None]


def _ref_branch(x, p, gelu_fn):
    y = _ref_convt2x2(x, p["w1"], p["b1"])
    y = gelu_fn(_ref_ln2d(y, p["ln_g"], p["ln_b"]))
    return _ref_convt2x2(y, p["w2"], p["b2"])


def _ref_fusion(enc, skips, emb_p, bridge_p, gelu_fn):
    out = _ref_branch(enc, emb_p, gelu_fn)
    for k in range(3):
        out = out + _ref_branch(skips[k], bridge_p[k], gelu_fn)
    return out


# ---------------------------------------------------------------------------
# Deterministic parameter init + driver
# ---------------------------------------------------------------------------

def _init_branch(key, cin, cmid, cout):
    k1, k2, k3, k4 = jax.random.split(key, 4)
    return {
        "w1": 0.1 * jax.random.normal(k1, (cin, cmid, 2, 2), jnp.float32),
        "b1": 0.01 * jax.random.normal(k2, (cmid,), jnp.float32),
        "ln_g": jnp.ones((cmid,), jnp.float32),       # PyTorch LayerNorm2d default
        "ln_b": jnp.zeros((cmid,), jnp.float32),
        "w2": 0.1 * jax.random.normal(k3, (cmid, cout, 2, 2), jnp.float32),
        "b2": 0.01 * jax.random.normal(k4, (cout,), jnp.float32),
    }


if __name__ == "__main__":
    # Small synthetic shapes consistent with the module's structure:
    #   batch N=2, patch_dim=32, patch_grid G=8, bridge_dim=64
    N, PATCH_DIM, G, BRIDGE = 2, 32, 8, 64

    key = jax.random.PRNGKey(0)
    keys = jax.random.split(key, 8)

    encoded_image = jax.random.normal(keys[0], (N, BRIDGE, G, G), jnp.float32)
    skips = [jax.random.normal(keys[1 + i], (N, PATCH_DIM, G, G), jnp.float32)
             for i in range(3)]

    # embedding_decoder: bridge -> bridge//4 -> bridge//8
    emb_params = _init_branch(keys[4], BRIDGE, BRIDGE // 4, BRIDGE // 8)
    # decoder_bridges[k]: patch_dim -> bridge -> bridge//8
    bridge_params = [_init_branch(keys[5 + i], PATCH_DIM, BRIDGE, BRIDGE // 8)
                     for i in range(3)]

    gelu_exact = lambda x: 0.5 * x * (1.0 + jax.lax.erf(x * 0.7071067811865476))
    ref_tanh = _ref_fusion(encoded_image, skips, emb_params, bridge_params, _gelu_tanh)
    ref_erf = _ref_fusion(encoded_image, skips, emb_params, bridge_params, gelu_exact)

    # f32 matmul path: tight check vs a reference using the same tanh-GELU
    fuse_f32 = jax.jit(functools.partial(multi_stream_decoder_fusion,
                                         compute_dtype=jnp.float32))
    out_f32 = jax.block_until_ready(
        fuse_f32(encoded_image, skips, emb_params, bridge_params))
    assert out_f32.shape == (N, BRIDGE // 8, 4 * G, 4 * G), out_f32.shape
    err = float(jnp.max(jnp.abs(out_f32 - ref_tanh)))
    assert err < 2e-2, f"f32 mismatch vs tanh-GELU reference: max abs err {err}"
    # Sanity bound vs PyTorch-exact (erf) GELU reference (documented approximation).
    err_erf = float(jnp.max(jnp.abs(out_f32 - ref_erf)))
    assert err_erf < 0.1, f"f32 mismatch vs exact-GELU reference: max abs err {err_erf}"

    # bf16 matmul path (perf config on v5e/v6e/v7x; LN/GELU stats stay f32)
    fuse_bf16 = jax.jit(functools.partial(multi_stream_decoder_fusion,
                                          compute_dtype=jnp.bfloat16))
    out_bf16 = jax.block_until_ready(
        fuse_bf16(encoded_image, skips, emb_params, bridge_params))
    err_bf16 = float(jnp.max(jnp.abs(out_bf16 - ref_tanh)))
    assert err_bf16 < 0.15, f"bf16 mismatch vs reference: max abs err {err_bf16}"

    print("KERNEL_OK")
</pallas_src>

<mosaic_0001>
module attributes {stable_mosaic.version = 11 : i64} {
  func.func @_fused_decoder_kernel(%arg0: i32, %arg1: memref<64x64xf32, #tpu.memory_space<vmem>>, %arg2: memref<64x32xf32, #tpu.memory_space<vmem>>, %arg3: memref<64x32xf32, #tpu.memory_space<vmem>>, %arg4: memref<64x32xf32, #tpu.memory_space<vmem>>, %arg5: memref<64x64xf32, #tpu.memory_space<vmem>>, %arg6: memref<1x64xf32, #tpu.memory_space<vmem>>, %arg7: memref<1x16xf32, #tpu.memory_space<vmem>>, %arg8: memref<1x16xf32, #tpu.memory_space<vmem>>, %arg9: memref<3x32x256xf32, #tpu.memory_space<vmem>>, %arg10: memref<3x1x256xf32, #tpu.memory_space<vmem>>, %arg11: memref<3x1x64xf32, #tpu.memory_space<vmem>>, %arg12: memref<3x1x64xf32, #tpu.memory_space<vmem>>, %arg13: memref<208x32xf32, #tpu.memory_space<vmem>>, %arg14: memref<1x32xf32, #tpu.memory_space<vmem>>, %arg15: memref<64x128xf32, #tpu.memory_space<vmem>>) attributes {dimension_semantics = [#tpu.dimension_semantics<parallel>], iteration_bounds = array<i64: 2>, scalar_prefetch = 0 : i64, scratch_operands = 0 : i64, tpu.core_type = #tpu.core_type<tc>, window_params = [{transform_indices = @transform_0, window_bounds = array<i64: 64, 64>}, {transform_indices = @transform_1, window_bounds = array<i64: 64, 32>}, {transform_indices = @transform_2, window_bounds = array<i64: 64, 32>}, {transform_indices = @transform_3, window_bounds = array<i64: 64, 32>}, {pipeline_mode = #tpu.pipeline_mode<synchronous>, transform_indices = @transform_4, window_bounds = array<i64: 64, 64>}, {pipeline_mode = #tpu.pipeline_mode<synchronous>, transform_indices = @transform_5, window_bounds = array<i64: 1, 64>}, {pipeline_mode = #tpu.pipeline_mode<synchronous>, transform_indices = @transform_6, window_bounds = array<i64: 1, 16>}, {pipeline_mode = #tpu.pipeline_mode<synchronous>, transform_indices = @transform_7, window_bounds = array<i64: 1, 16>}, {pipeline_mode = #tpu.pipeline_mode<synchronous>, transform_indices = @transform_8, window_bounds = array<i64: 3, 32, 256>}, {pipeline_mode = #tpu.pipeline_mode<synchronous>, transform_indices = @transform_9, window_bounds = array<i64: 3, 1, 256>}, {pipeline_mode = #tpu.pipeline_mode<synchronous>, transform_indices = @transform_10, window_bounds = array<i64: 3, 1, 64>}, {pipeline_mode = #tpu.pipeline_mode<synchronous>, transform_indices = @transform_11, window_bounds = array<i64: 3, 1, 64>}, {pipeline_mode = #tpu.pipeline_mode<synchronous>, transform_indices = @transform_12, window_bounds = array<i64: 208, 32>}, {pipeline_mode = #tpu.pipeline_mode<synchronous>, transform_indices = @transform_13, window_bounds = array<i64: 1, 32>}, {transform_indices = @transform_14, window_bounds = array<i64: 64, 128>}]} {
    %c0 = arith.constant 0 : index
    %c0_0 = arith.constant 0 : index
    %0 = vector.load %arg2[%c0, %c0_0] : memref<64x32xf32, #tpu.memory_space<vmem>>, vector<64x32xf32>
    %c0_1 = arith.constant 0 : index
    %c0_2 = arith.constant 0 : index
    %c0_3 = arith.constant 0 : index
    %1 = vector.load %arg9[%c0_1, %c0_2, %c0_3] : memref<3x32x256xf32, #tpu.memory_space<vmem>>, vector<1x32x256xf32>
    %2 = vector.shape_cast %1 : vector<1x32x256xf32> to vector<32x256xf32>
    %c0_4 = arith.constant 0 : index
    %c0_5 = arith.constant 0 : index
    %c0_6 = arith.constant 0 : index
    %3 = vector.load %arg10[%c0_4, %c0_5, %c0_6] : memref<3x1x256xf32, #tpu.memory_space<vmem>>, vector<1x1x256xf32>
    %4 = vector.shape_cast %3 : vector<1x1x256xf32> to vector<1x256xf32>
    %c0_7 = arith.constant 0 : index
    %c0_8 = arith.constant 0 : index
    %c0_9 = arith.constant 0 : index
    %5 = vector.load %arg11[%c0_7, %c0_8, %c0_9] : memref<3x1x64xf32, #tpu.memory_space<vmem>>, vector<1x1x64xf32>
    %6 = vector.shape_cast %5 : vector<1x1x64xf32> to vector<1x64xf32>
    %c0_10 = arith.constant 0 : index
    %c0_11 = arith.constant 0 : index
    %c0_12 = arith.constant 0 : index
    %7 = vector.load %arg12[%c0_10, %c0_11, %c0_12] : memref<3x1x64xf32, #tpu.memory_space<vmem>>, vector<1x1x64xf32>
    %8 = vector.shape_cast %7 : vector<1x1x64xf32> to vector<1x64xf32>
    %cst = arith.constant dense<0.000000e+00> : vector<64x256xf32>
    %9 = tpu.matmul %0, %2, %cst {dimension_numbers = #tpu.dot_dimension_numbers<[1], [0], [0], [1], [0, 0, 1, 1], [], []>} : vector<64x32xf32>, vector<32x256xf32>, vector<64x256xf32> -> vector<64x256xf32>
    %10 = vector.broadcast %4 : vector<1x256xf32> to vector<64x256xf32>
    %11 = arith.addf %9, %10 : vector<64x256xf32>
    %12 = vector.extract_strided_slice %11 {offsets = [0, 0], sizes = [64, 64], strides = [1, 1]} : vector<64x256xf32> to vector<64x64xf32>
    %cst_13 = arith.constant dense<0.000000e+00> : vector<64xf32>
    %13 = vector.multi_reduction <add>, %12, %cst_13 [1] : vector<64x64xf32> to vector<64xf32>
    %14 = vector.shape_cast %13 : vector<64xf32> to vector<64x1xf32>
    %cst_14 = arith.constant 6.400000e+01 : f32
    %15 = vector.broadcast %cst_14 : f32 to vector<64x1xf32>
    %16 = arith.divf %14, %15 : vector<64x1xf32>
    %17 = vector.broadcast %16 : vector<64x1xf32> to vector<64x64xf32>
    %18 = arith.subf %12, %17 : vector<64x64xf32>
    %19 = arith.mulf %18, %18 : vector<64x64xf32>
    %cst_15 = arith.constant dense<0.000000e+00> : vector<64xf32>
    %20 = vector.multi_reduction <add>, %19, %cst_15 [1] : vector<64x64xf32> to vector<64xf32>
    %21 = vector.shape_cast %20 : vector<64xf32> to vector<64x1xf32>
    %cst_16 = arith.constant 6.400000e+01 : f32
    %22 = vector.broadcast %cst_16 : f32 to vector<64x1xf32>
    %23 = arith.divf %21, %22 : vector<64x1xf32>
    %cst_17 = arith.constant 9.99999997E-7 : f32
    %24 = vector.broadcast %cst_17 : f32 to vector<64x1xf32>
    %25 = arith.addf %23, %24 : vector<64x1xf32>
    %26 = math.rsqrt %25 : vector<64x1xf32>
    %27 = vector.broadcast %26 : vector<64x1xf32> to vector<64x64xf32>
    %28 = arith.mulf %18, %27 : vector<64x64xf32>
    %29 = vector.broadcast %6 : vector<1x64xf32> to vector<64x64xf32>
    %30 = arith.mulf %28, %29 : vector<64x64xf32>
    %31 = vector.broadcast %8 : vector<1x64xf32> to vector<64x64xf32>
    %32 = arith.addf %30, %31 : vector<64x64xf32>
    %cst_18 = arith.constant 5.000000e-01 : f32
    %33 = vector.broadcast %cst_18 : f32 to vector<64x64xf32>
    %34 = arith.mulf %33, %32 : vector<64x64xf32>
    %cst_19 = arith.constant 4.471500e-02 : f32
    %35 = vector.broadcast %cst_19 : f32 to vector<64x64xf32>
    %36 = arith.mulf %35, %32 : vector<64x64xf32>
    %37 = arith.mulf %36, %32 : vector<64x64xf32>
    %38 = arith.mulf %37, %32 : vector<64x64xf32>
    %39 = arith.addf %32, %38 : vector<64x64xf32>
    %cst_20 = arith.constant 0.797884583 : f32
    %40 = vector.broadcast %cst_20 : f32 to vector<64x64xf32>
    %41 = arith.mulf %40, %39 : vector<64x64xf32>
    %42 = math.tanh %41 : vector<64x64xf32>
    %cst_21 = arith.constant 1.000000e+00 : f32
    %43 = vector.broadcast %cst_21 : f32 to vector<64x64xf32>
    %44 = arith.addf %43, %42 : vector<64x64xf32>
    %45 = arith.mulf %34, %44 : vector<64x64xf32>
    %46 = vector.extract_strided_slice %11 {offsets = [0, 64], sizes = [64, 64], strides = [1, 1]} : vector<64x256xf32> to vector<64x64xf32>
    %cst_22 = arith.constant dense<0.000000e+00> : vector<64xf32>
    %47 = vector.multi_reduction <add>, %46, %cst_22 [1] : vector<64x64xf32> to vector<64xf32>
    %48 = vector.shape_cast %47 : vector<64xf32> to vector<64x1xf32>
    %cst_23 = arith.constant 6.400000e+01 : f32
    %49 = vector.broadcast %cst_23 : f32 to vector<64x1xf32>
    %50 = arith.divf %48, %49 : vector<64x1xf32>
    %51 = vector.broadcast %50 : vector<64x1xf32> to vector<64x64xf32>
    %52 = arith.subf %46, %51 : vector<64x64xf32>
    %53 = arith.mulf %52, %52 : vector<64x64xf32>
    %cst_24 = arith.constant dense<0.000000e+00> : vector<64xf32>
    %54 = vector.multi_reduction <add>, %53, %cst_24 [1] : vector<64x64xf32> to vector<64xf32>
    %55 = vector.shape_cast %54 : vector<64xf32> to vector<64x1xf32>
    %cst_25 = arith.constant 6.400000e+01 : f32
    %56 = vector.broadcast %cst_25 : f32 to vector<64x1xf32>
    %57 = arith.divf %55, %56 : vector<64x1xf32>
    %cst_26 = arith.constant 9.99999997E-7 : f32
    %58 = vector.broadcast %cst_26 : f32 to vector<64x1xf32>
    %59 = arith.addf %57, %58 : vector<64x1xf32>
    %60 = math.rsqrt %59 : vector<64x1xf32>
    %61 = vector.broadcast %60 : vector<64x1xf32> to vector<64x64xf32>
    %62 = arith.mulf %52, %61 : vector<64x64xf32>
    %63 = vector.broadcast %6 : vector<1x64xf32> to vector<64x64xf32>
    %64 = arith.mulf %62, %63 : vector<64x64xf32>
    %65 = vector.broadcast %8 : vector<1x64xf32> to vector<64x64xf32>
    %66 = arith.addf %64, %65 : vector<64x64xf32>
    %cst_27 = arith.constant 5.000000e-01 : f32
    %67 = vector.broadcast %cst_27 : f32 to vector<64x64xf32>
    %68 = arith.mulf %67, %66 : vector<64x64xf32>
    %cst_28 = arith.constant 4.471500e-02 : f32
    %69 = vector.broadcast %cst_28 : f32 to vector<64x64xf32>
    %70 = arith.mulf %69, %66 : vector<64x64xf32>
    %71 = arith.mulf %70, %66 : vector<64x64xf32>
    %72 = arith.mulf %71, %66 : vector<64x64xf32>
    %73 = arith.addf %66, %72 : vector<64x64xf32>
    %cst_29 = arith.constant 0.797884583 : f32
    %74 = vector.broadcast %cst_29 : f32 to vector<64x64xf32>
    %75 = arith.mulf %74, %73 : vector<64x64xf32>
    %76 = math.tanh %75 : vector<64x64xf32>
    %cst_30 = arith.constant 1.000000e+00 : f32
    %77 = vector.broadcast %cst_30 : f32 to vector<64x64xf32>
    %78 = arith.addf %77, %76 : vector<64x64xf32>
    %79 = arith.mulf %68, %78 : vector<64x64xf32>
    %80 = vector.extract_strided_slice %11 {offsets = [0, 128], sizes = [64, 64], strides = [1, 1]} : vector<64x256xf32> to vector<64x64xf32>
    %cst_31 = arith.constant dense<0.000000e+00> : vector<64xf32>
    %81 = vector.multi_reduction <add>, %80, %cst_31 [1] : vector<64x64xf32> to vector<64xf32>
    %82 = vector.shape_cast %81 : vector<64xf32> to vector<64x1xf32>
    %cst_32 = arith.constant 6.400000e+01 : f32
    %83 = vector.broadcast %cst_32 : f32 to vector<64x1xf32>
    %84 = arith.divf %82, %83 : vector<64x1xf32>
    %85 = vector.broadcast %84 : vector<64x1xf32> to vector<64x64xf32>
    %86 = arith.subf %80, %85 : vector<64x64xf32>
    %87 = arith.mulf %86, %86 : vector<64x64xf32>
    %cst_33 = arith.constant dense<0.000000e+00> : vector<64xf32>
    %88 = vector.multi_reduction <add>, %87, %cst_33 [1] : vector<64x64xf32> to vector<64xf32>
    %89 = vector.shape_cast %88 : vector<64xf32> to vector<64x1xf32>
    %cst_34 = arith.constant 6.400000e+01 : f32
    %90 = vector.broadcast %cst_34 : f32 to vector<64x1xf32>
    %91 = arith.divf %89, %90 : vector<64x1xf32>
    %cst_35 = arith.constant 9.99999997E-7 : f32
    %92 = vector.broadcast %cst_35 : f32 to vector<64x1xf32>
    %93 = arith.addf %91, %92 : vector<64x1xf32>
    %94 = math.rsqrt %93 : vector<64x1xf32>
    %95 = vector.broadcast %94 : vector<64x1xf32> to vector<64x64xf32>
    %96 = arith.mulf %86, %95 : vector<64x64xf32>
    %97 = vector.broadcast %6 : vector<1x64xf32> to vector<64x64xf32>
    %98 = arith.mulf %96, %97 : vector<64x64xf32>
    %99 = vector.broadcast %8 : vector<1x64xf32> to vector<64x64xf32>
    %100 = arith.addf %98, %99 : vector<64x64xf32>
    %cst_36 = arith.constant 5.000000e-01 : f32
    %101 = vector.broadcast %cst_36 : f32 to vector<64x64xf32>
    %102 = arith.mulf %101, %100 : vector<64x64xf32>
    %cst_37 = arith.constant 4.471500e-02 : f32
    %103 = vector.broadcast %cst_37 : f32 to vector<64x64xf32>
    %104 = arith.mulf %103, %100 : vector<64x64xf32>
    %105 = arith.mulf %104, %100 : vector<64x64xf32>
    %106 = arith.mulf %105, %100 : vector<64x64xf32>
    %107 = arith.addf %100, %106 : vector<64x64xf32>
    %cst_38 = arith.constant 0.797884583 : f32
    %108 = vector.broadcast %cst_38 : f32 to vector<64x64xf32>
    %109 = arith.mulf %108, %107 : vector<64x64xf32>
    %110 = math.tanh %109 : vector<64x64xf32>
    %cst_39 = arith.constant 1.000000e+00 : f32
    %111 = vector.broadcast %cst_39 : f32 to vector<64x64xf32>
    %112 = arith.addf %111, %110 : vector<64x64xf32>
    %113 = arith.mulf %102, %112 : vector<64x64xf32>
    %114 = vector.extract_strided_slice %11 {offsets = [0, 192], sizes = [64, 64], strides = [1, 1]} : vector<64x256xf32> to vector<64x64xf32>
    %cst_40 = arith.constant dense<0.000000e+00> : vector<64xf32>
    %115 = vector.multi_reduction <add>, %114, %cst_40 [1] : vector<64x64xf32> to vector<64xf32>
    %116 = vector.shape_cast %115 : vector<64xf32> to vector<64x1xf32>
    %cst_41 = arith.constant 6.400000e+01 : f32
    %117 = vector.broadcast %cst_41 : f32 to vector<64x1xf32>
    %118 = arith.divf %116, %117 : vector<64x1xf32>
    %119 = vector.broadcast %118 : vector<64x1xf32> to vector<64x64xf32>
    %120 = arith.subf %114, %119 : vector<64x64xf32>
    %121 = arith.mulf %120, %120 : vector<64x64xf32>
    %cst_42 = arith.constant dense<0.000000e+00> : vector<64xf32>
    %122 = vector.multi_reduction <add>, %121, %cst_42 [1] : vector<64x64xf32> to vector<64xf32>
    %123 = vector.shape_cast %122 : vector<64xf32> to vector<64x1xf32>
    %cst_43 = arith.constant 6.400000e+01 : f32
    %124 = vector.broadcast %cst_43 : f32 to vector<64x1xf32>
    %125 = arith.divf %123, %124 : vector<64x1xf32>
    %cst_44 = arith.constant 9.99999997E-7 : f32
    %126 = vector.broadcast %cst_44 : f32 to vector<64x1xf32>
    %127 = arith.addf %125, %126 : vector<64x1xf32>
    %128 = math.rsqrt %127 : vector<64x1xf32>
    %129 = vector.broadcast %128 : vector<64x1xf32> to vector<64x64xf32>
    %130 = arith.mulf %120, %129 : vector<64x64xf32>
    %131 = vector.broadcast %6 : vector<1x64xf32> to vector<64x64xf32>
    %132 = arith.mulf %130, %131 : vector<64x64xf32>
    %133 = vector.broadcast %8 : vector<1x64xf32> to vector<64x64xf32>
    %134 = arith.addf %132, %133 : vector<64x64xf32>
    %cst_45 = arith.constant 5.000000e-01 : f32
    %135 = vector.broadcast %cst_45 : f32 to vector<64x64xf32>
    %136 = arith.mulf %135, %134 : vector<64x64xf32>
    %cst_46 = arith.constant 4.471500e-02 : f32
    %137 = vector.broadcast %cst_46 : f32 to vector<64x64xf32>
    %138 = arith.mulf %137, %134 : vector<64x64xf32>
    %139 = arith.mulf %138, %134 : vector<64x64xf32>
    %140 = arith.mulf %139, %134 : vector<64x64xf32>
    %141 = arith.addf %134, %140 : vector<64x64xf32>
    %cst_47 = arith.constant 0.797884583 : f32
    %142 = vector.broadcast %cst_47 : f32 to vector<64x64xf32>
    %143 = arith.mulf %142, %141 : vector<64x64xf32>
    %144 = math.tanh %143 : vector<64x64xf32>
    %cst_48 = arith.constant 1.000000e+00 : f32
    %145 = vector.broadcast %cst_48 : f32 to vector<64x64xf32>
    %146 = arith.addf %145, %144 : vector<64x64xf32>
    %147 = arith.mulf %136, %146 : vector<64x64xf32>
    %c0_49 = arith.constant 0 : index
    %c0_50 = arith.constant 0 : index
    %148 = vector.load %arg3[%c0_49, %c0_50] : memref<64x32xf32, #tpu.memory_space<vmem>>, vector<64x32xf32>
    %c1 = arith.constant 1 : index
    %c0_51 = arith.constant 0 : index
    %c0_52 = arith.constant 0 : index
    %149 = vector.load %arg9[%c1, %c0_51, %c0_52] : memref<3x32x256xf32, #tpu.memory_space<vmem>>, vector<1x32x256xf32>
    %150 = vector.shape_cast %149 : vector<1x32x256xf32> to vector<32x256xf32>
    %c1_53 = arith.constant 1 : index
    %c0_54 = arith.constant 0 : index
    %c0_55 = arith.constant 0 : index
    %151 = vector.load %arg10[%c1_53, %c0_54, %c0_55] : memref<3x1x256xf32, #tpu.memory_space<vmem>>, vector<1x1x256xf32>
    %152 = vector.shape_cast %151 : vector<1x1x256xf32> to vector<1x256xf32>
    %c1_56 = arith.constant 1 : index
    %c0_57 = arith.constant 0 : index
    %c0_58 = arith.constant 0 : index
    %153 = vector.load %arg11[%c1_56, %c0_57, %c0_58] : memref<3x1x64xf32, #tpu.memory_space<vmem>>, vector<1x1x64xf32>
    %154 = vector.shape_cast %153 : vector<1x1x64xf32> to vector<1x64xf32>
    %c1_59 = arith.constant 1 : index
    %c0_60 = arith.constant 0 : index
    %c0_61 = arith.constant 0 : index
    %155 = vector.load %arg12[%c1_59, %c0_60, %c0_61] : memref<3x1x64xf32, #tpu.memory_space<vmem>>, vector<1x1x64xf32>
    %156 = vector.shape_cast %155 : vector<1x1x64xf32> to vector<1x64xf32>
    %cst_62 = arith.constant dense<0.000000e+00> : vector<64x256xf32>
    %157 = tpu.matmul %148, %150, %cst_62 {dimension_numbers = #tpu.dot_dimension_numbers<[1], [0], [0], [1], [0, 0, 1, 1], [], []>} : vector<64x32xf32>, vector<32x256xf32>, vector<64x256xf32> -> vector<64x256xf32>
    %158 = vector.broadcast %152 : vector<1x256xf32> to vector<64x256xf32>
    %159 = arith.addf %157, %158 : vector<64x256xf32>
    %160 = vector.extract_strided_slice %159 {offsets = [0, 0], sizes = [64, 64], strides = [1, 1]} : vector<64x256xf32> to vector<64x64xf32>
    %cst_63 = arith.constant dense<0.000000e+00> : vector<64xf32>
    %161 = vector.multi_reduction <add>, %160, %cst_63 [1] : vector<64x64xf32> to vector<64xf32>
    %162 = vector.shape_cast %161 : vector<64xf32> to vector<64x1xf32>
    %cst_64 = arith.constant 6.400000e+01 : f32
    %163 = vector.broadcast %cst_64 : f32 to vector<64x1xf32>
    %164 = arith.divf %162, %163 : vector<64x1xf32>
    %165 = vector.broadcast %164 : vector<64x1xf32> to vector<64x64xf32>
    %166 = arith.subf %160, %165 : vector<64x64xf32>
    %167 = arith.mulf %166, %166 : vector<64x64xf32>
    %cst_65 = arith.constant dense<0.000000e+00> : vector<64xf32>
    %168 = vector.multi_reduction <add>, %167, %cst_65 [1] : vector<64x64xf32> to vector<64xf32>
    %169 = vector.shape_cast %168 : vector<64xf32> to vector<64x1xf32>
    %cst_66 = arith.constant 6.400000e+01 : f32
    %170 = vector.broadcast %cst_66 : f32 to vector<64x1xf32>
    %171 = arith.divf %169, %170 : vector<64x1xf32>
    %cst_67 = arith.constant 9.99999997E-7 : f32
    %172 = vector.broadcast %cst_67 : f32 to vector<64x1xf32>
    %173 = arith.addf %171, %172 : vector<64x1xf32>
    %174 = math.rsqrt %173 : vector<64x1xf32>
    %175 = vector.broadcast %174 : vector<64x1xf32> to vector<64x64xf32>
    %176 = arith.mulf %166, %175 : vector<64x64xf32>
    %177 = vector.broadcast %154 : vector<1x64xf32> to vector<64x64xf32>
    %178 = arith.mulf %176, %177 : vector<64x64xf32>
    %179 = vector.broadcast %156 : vector<1x64xf32> to vector<64x64xf32>
    %180 = arith.addf %178, %179 : vector<64x64xf32>
    %cst_68 = arith.constant 5.000000e-01 : f32
    %181 = vector.broadcast %cst_68 : f32 to vector<64x64xf32>
    %182 = arith.mulf %181, %180 : vector<64x64xf32>
    %cst_69 = arith.constant 4.471500e-02 : f32
    %183 = vector.broadcast %cst_69 : f32 to vector<64x64xf32>
    %184 = arith.mulf %183, %180 : vector<64x64xf32>
    %185 = arith.mulf %184, %180 : vector<64x64xf32>
    %186 = arith.mulf %185, %180 : vector<64x64xf32>
    %187 = arith.addf %180, %186 : vector<64x64xf32>
    %cst_70 = arith.constant 0.797884583 : f32
    %188 = vector.broadcast %cst_70 : f32 to vector<64x64xf32>
    %189 = arith.mulf %188, %187 : vector<64x64xf32>
    %190 = math.tanh %189 : vector<64x64xf32>
    %cst_71 = arith.constant 1.000000e+00 : f32
    %191 = vector.broadcast %cst_71 : f32 to vector<64x64xf32>
    %192 = arith.addf %191, %190 : vector<64x64xf32>
    %193 = arith.mulf %182, %192 : vector<64x64xf32>
    %194 = vector.extract_strided_slice %159 {offsets = [0, 64], sizes = [64, 64], strides = [1, 1]} : vector<64x256xf32> to vector<64x64xf32>
    %cst_72 = arith.constant dense<0.000000e+00> : vector<64xf32>
    %195 = vector.multi_reduction <add>, %194, %cst_72 [1] : vector<64x64xf32> to vector<64xf32>
    %196 = vector.shape_cast %195 : vector<64xf32> to vector<64x1xf32>
    %cst_73 = arith.constant 6.400000e+01 : f32
    %197 = vector.broadcast %cst_73 : f32 to vector<64x1xf32>
    %198 = arith.divf %196, %197 : vector<64x1xf32>
    %199 = vector.broadcast %198 : vector<64x1xf32> to vector<64x64xf32>
    %200 = arith.subf %194, %199 : vector<64x64xf32>
    %201 = arith.mulf %200, %200 : vector<64x64xf32>
    %cst_74 = arith.constant dense<0.000000e+00> : vector<64xf32>
    %202 = vector.multi_reduction <add>, %201, %cst_74 [1] : vector<64x64xf32> to vector<64xf32>
    %203 = vector.shape_cast %202 : vector<64xf32> to vector<64x1xf32>
    %cst_75 = arith.constant 6.400000e+01 : f32
    %204 = vector.broadcast %cst_75 : f32 to vector<64x1xf32>
    %205 = arith.divf %203, %204 : vector<64x1xf32>
    %cst_76 = arith.constant 9.99999997E-7 : f32
    %206 = vector.broadcast %cst_76 : f32 to vector<64x1xf32>
    %207 = arith.addf %205, %206 : vector<64x1xf32>
    %208 = math.rsqrt %207 : vector<64x1xf32>
    %209 = vector.broadcast %208 : vector<64x1xf32> to vector<64x64xf32>
    %210 = arith.mulf %200, %209 : vector<64x64xf32>
    %211 = vector.broadcast %154 : vector<1x64xf32> to vector<64x64xf32>
    %212 = arith.mulf %210, %211 : vector<64x64xf32>
    %213 = vector.broadcast %156 : vector<1x64xf32> to vector<64x64xf32>
    %214 = arith.addf %212, %213 : vector<64x64xf32>
    %cst_77 = arith.constant 5.000000e-01 : f32
    %215 = vector.broadcast %cst_77 : f32 to vector<64x64xf32>
    %216 = arith.mulf %215, %214 : vector<64x64xf32>
    %cst_78 = arith.constant 4.471500e-02 : f32
    %217 = vector.broadcast %cst_78 : f32 to vector<64x64xf32>
    %218 = arith.mulf %217, %214 : vector<64x64xf32>
    %219 = arith.mulf %218, %214 : vector<64x64xf32>
    %220 = arith.mulf %219, %214 : vector<64x64xf32>
    %221 = arith.addf %214, %220 : vector<64x64xf32>
    %cst_79 = arith.constant 0.797884583 : f32
    %222 = vector.broadcast %cst_79 : f32 to vector<64x64xf32>
    %223 = arith.mulf %222, %221 : vector<64x64xf32>
    %224 = math.tanh %223 : vector<64x64xf32>
    %cst_80 = arith.constant 1.000000e+00 : f32
    %225 = vector.broadcast %cst_80 : f32 to vector<64x64xf32>
    %226 = arith.addf %225, %224 : vector<64x64xf32>
    %227 = arith.mulf %216, %226 : vector<64x64xf32>
    %228 = vector.extract_strided_slice %159 {offsets = [0, 128], sizes = [64, 64], strides = [1, 1]} : vector<64x256xf32> to vector<64x64xf32>
    %cst_81 = arith.constant dense<0.000000e+00> : vector<64xf32>
    %229 = vector.multi_reduction <add>, %228, %cst_81 [1] : vector<64x64xf32> to vector<64xf32>
    %230 = vector.shape_cast %229 : vector<64xf32> to vector<64x1xf32>
    %cst_82 = arith.constant 6.400000e+01 : f32
    %231 = vector.broadcast %cst_82 : f32 to vector<64x1xf32>
    %232 = arith.divf %230, %231 : vector<64x1xf32>
    %233 = vector.broadcast %232 : vector<64x1xf32> to vector<64x64xf32>
    %234 = arith.subf %228, %233 : vector<64x64xf32>
    %235 = arith.mulf %234, %234 : vector<64x64xf32>
    %cst_83 = arith.constant dense<0.000000e+00> : vector<64xf32>
    %236 = vector.multi_reduction <add>, %235, %cst_83 [1] : vector<64x64xf32> to vector<64xf32>
    %237 = vector.shape_cast %236 : vector<64xf32> to vector<64x1xf32>
    %cst_84 = arith.constant 6.400000e+01 : f32
    %238 = vector.broadcast %cst_84 : f32 to vector<64x1xf32>
    %239 = arith.divf %237, %238 : vector<64x1xf32>
    %cst_85 = arith.constant 9.99999997E-7 : f32
    %240 = vector.broadcast %cst_85 : f32 to vector<64x1xf32>
    %241 = arith.addf %239, %240 : vector<64x1xf32>
    %242 = math.rsqrt %241 : vector<64x1xf32>
    %243 = vector.broadcast %242 : vector<64x1xf32> to vector<64x64xf32>
    %244 = arith.mulf %234, %243 : vector<64x64xf32>
    %245 = vector.broadcast %154 : vector<1x64xf32> to vector<64x64xf32>
    %246 = arith.mulf %244, %245 : vector<64x64xf32>
    %247 = vector.broadcast %156 : vector<1x64xf32> to vector<64x64xf32>
    %248 = arith.addf %246, %247 : vector<64x64xf32>
    %cst_86 = arith.constant 5.000000e-01 : f32
    %249 = vector.broadcast %cst_86 : f32 to vector<64x64xf32>
    %250 = arith.mulf %249, %248 : vector<64x64xf32>
    %cst_87 = arith.constant 4.471500e-02 : f32
    %251 = vector.broadcast %cst_87 : f32 to vector<64x64xf32>
    %252 = arith.mulf %251, %248 : vector<64x64xf32>
    %253 = arith.mulf %252, %248 : vector<64x64xf32>
    %254 = arith.mulf %253, %248 : vector<64x64xf32>
    %255 = arith.addf %248, %254 : vector<64x64xf32>
    %cst_88 = arith.constant 0.797884583 : f32
    %256 = vector.broadcast %cst_88 : f32 to vector<64x64xf32>
    %257 = arith.mulf %256, %255 : vector<64x64xf32>
    %258 = math.tanh %257 : vector<64x64xf32>
    %cst_89 = arith.constant 1.000000e+00 : f32
    %259 = vector.broadcast %cst_89 : f32 to vector<64x64xf32>
    %260 = arith.addf %259, %258 : vector<64x64xf32>
    %261 = arith.mulf %250, %260 : vector<64x64xf32>
    %262 = vector.extract_strided_slice %159 {offsets = [0, 192], sizes = [64, 64], strides = [1, 1]} : vector<64x256xf32> to vector<64x64xf32>
    %cst_90 = arith.constant dense<0.000000e+00> : vector<64xf32>
    %263 = vector.multi_reduction <add>, %262, %cst_90 [1] : vector<64x64xf32> to vector<64xf32>
    %264 = vector.shape_cast %263 : vector<64xf32> to vector<64x1xf32>
    %cst_91 = arith.constant 6.400000e+01 : f32
    %265 = vector.broadcast %cst_91 : f32 to vector<64x1xf32>
    %266 = arith.divf %264, %265 : vector<64x1xf32>
    %267 = vector.broadcast %266 : vector<64x1xf32> to vector<64x64xf32>
    %268 = arith.subf %262, %267 : vector<64x64xf32>
    %269 = arith.mulf %268, %268 : vector<64x64xf32>
    %cst_92 = arith.constant dense<0.000000e+00> : vector<64xf32>
    %270 = vector.multi_reduction <add>, %269, %cst_92 [1] : vector<64x64xf32> to vector<64xf32>
    %271 = vector.shape_cast %270 : vector<64xf32> to vector<64x1xf32>
    %cst_93 = arith.constant 6.400000e+01 : f32
    %272 = vector.broadcast %cst_93 : f32 to vector<64x1xf32>
    %273 = arith.divf %271, %272 : vector<64x1xf32>
    %cst_94 = arith.constant 9.99999997E-7 : f32
    %274 = vector.broadcast %cst_94 : f32 to vector<64x1xf32>
    %275 = arith.addf %273, %274 : vector<64x1xf32>
    %276 = math.rsqrt %275 : vector<64x1xf32>
    %277 = vector.broadcast %276 : vector<64x1xf32> to vector<64x64xf32>
    %278 = arith.mulf %268, %277 : vector<64x64xf32>
    %279 = vector.broadcast %154 : vector<1x64xf32> to vector<64x64xf32>
    %280 = arith.mulf %278, %279 : vector<64x64xf32>
    %281 = vector.broadcast %156 : vector<1x64xf32> to vector<64x64xf32>
    %282 = arith.addf %280, %281 : vector<64x64xf32>
    %cst_95 = arith.constant 5.000000e-01 : f32
    %283 = vector.broadcast %cst_95 : f32 to vector<64x64xf32>
    %284 = arith.mulf %283, %282 : vector<64x64xf32>
    %cst_96 = arith.constant 4.471500e-02 : f32
    %285 = vector.broadcast %cst_96 : f32 to vector<64x64xf32>
    %286 = arith.mulf %285, %282 : vector<64x64xf32>
    %287 = arith.mulf %286, %282 : vector<64x64xf32>
    %288 = arith.mulf %287, %282 : vector<64x64xf32>
    %289 = arith.addf %282, %288 : vector<64x64xf32>
    %cst_97 = arith.constant 0.797884583 : f32
    %290 = vector.broadcast %cst_97 : f32 to vector<64x64xf32>
    %291 = arith.mulf %290, %289 : vector<64x64xf32>
    %292 = math.tanh %291 : vector<64x64xf32>
    %cst_98 = arith.constant 1.000000e+00 : f32
    %293 = vector.broadcast %cst_98 : f32 to vector<64x64xf32>
    %294 = arith.addf %293, %292 : vector<64x64xf32>
    %295 = arith.mulf %284, %294 : vector<64x64xf32>
    %c0_99 = arith.constant 0 : index
    %c0_100 = arith.constant 0 : index
    %296 = vector.load %arg4[%c0_99, %c0_100] : memref<64x32xf32, #tpu.memory_space<vmem>>, vector<64x32xf32>
    %c2 = arith.constant 2 : index
    %c0_101 = arith.constant 0 : index
    %c0_102 = arith.constant 0 : index
    %297 = vector.load %arg9[%c2, %c0_101, %c0_102] : memref<3x32x256xf32, #tpu.memory_space<vmem>>, vector<1x32x256xf32>
    %298 = vector.shape_cast %297 : vector<1x32x256xf32> to vector<32x256xf32>
    %c2_103 = arith.constant 2 : index
    %c0_104 = arith.constant 0 : index
    %c0_105 = arith.constant 0 : index
    %299 = vector.load %arg10[%c2_103, %c0_104, %c0_105] : memref<3x1x256xf32, #tpu.memory_space<vmem>>, vector<1x1x256xf32>
    %300 = vector.shape_cast %299 : vector<1x1x256xf32> to vector<1x256xf32>
    %c2_106 = arith.constant 2 : index
    %c0_107 = arith.constant 0 : index
    %c0_108 = arith.constant 0 : index
    %301 = vector.load %arg11[%c2_106, %c0_107, %c0_108] : memref<3x1x64xf32, #tpu.memory_space<vmem>>, vector<1x1x64xf32>
    %302 = vector.shape_cast %301 : vector<1x1x64xf32> to vector<1x64xf32>
    %c2_109 = arith.constant 2 : index
    %c0_110 = arith.constant 0 : index
    %c0_111 = arith.constant 0 : index
    %303 = vector.load %arg12[%c2_109, %c0_110, %c0_111] : memref<3x1x64xf32, #tpu.memory_space<vmem>>, vector<1x1x64xf32>
    %304 = vector.shape_cast %303 : vector<1x1x64xf32> to vector<1x64xf32>
    %cst_112 = arith.constant dense<0.000000e+00> : vector<64x256xf32>
    %305 = tpu.matmul %296, %298, %cst_112 {dimension_numbers = #tpu.dot_dimension_numbers<[1], [0], [0], [1], [0, 0, 1, 1], [], []>} : vector<64x32xf32>, vector<32x256xf32>, vector<64x256xf32> -> vector<64x256xf32>
    %306 = vector.broadcast %300 : vector<1x256xf32> to vector<64x256xf32>
    %307 = arith.addf %305, %306 : vector<64x256xf32>
    %308 = vector.extract_strided_slice %307 {offsets = [0, 0], sizes = [64, 64], strides = [1, 1]} : vector<64x256xf32> to vector<64x64xf32>
    %cst_113 = arith.constant dense<0.000000e+00> : vector<64xf32>
    %309 = vector.multi_reduction <add>, %308, %cst_113 [1] : vector<64x64xf32> to vector<64xf32>
    %310 = vector.shape_cast %309 : vector<64xf32> to vector<64x1xf32>
    %cst_114 = arith.constant 6.400000e+01 : f32
    %311 = vector.broadcast %cst_114 : f32 to vector<64x1xf32>
    %312 = arith.divf %310, %311 : vector<64x1xf32>
    %313 = vector.broadcast %312 : vector<64x1xf32> to vector<64x64xf32>
    %314 = arith.subf %308, %313 : vector<64x64xf32>
    %315 = arith.mulf %314, %314 : vector<64x64xf32>
    %cst_115 = arith.constant dense<0.000000e+00> : vector<64xf32>
    %316 = vector.multi_reduction <add>, %315, %cst_115 [1] : vector<64x64xf32> to vector<64xf32>
    %317 = vector.shape_cast %316 : vector<64xf32> to vector<64x1xf32>
    %cst_116 = arith.constant 6.400000e+01 : f32
    %318 = vector.broadcast %cst_116 : f32 to vector<64x1xf32>
    %319 = arith.divf %317, %318 : vector<64x1xf32>
    %cst_117 = arith.constant 9.99999997E-7 : f32
    %320 = vector.broadcast %cst_117 : f32 to vector<64x1xf32>
    %321 = arith.addf %319, %320 : vector<64x1xf32>
    %322 = math.rsqrt %321 : vector<64x1xf32>
    %323 = vector.broadcast %322 : vector<64x1xf32> to vector<64x64xf32>
    %324 = arith.mulf %314, %323 : vector<64x64xf32>
    %325 = vector.broadcast %302 : vector<1x64xf32> to vector<64x64xf32>
    %326 = arith.mulf %324, %325 : vector<64x64xf32>
    %327 = vector.broadcast %304 : vector<1x64xf32> to vector<64x64xf32>
    %328 = arith.addf %326, %327 : vector<64x64xf32>
    %cst_118 = arith.constant 5.000000e-01 : f32
    %329 = vector.broadcast %cst_118 : f32 to vector<64x64xf32>
    %330 = arith.mulf %329, %328 : vector<64x64xf32>
    %cst_119 = arith.constant 4.471500e-02 : f32
    %331 = vector.broadcast %cst_119 : f32 to vector<64x64xf32>
    %332 = arith.mulf %331, %328 : vector<64x64xf32>
    %333 = arith.mulf %332, %328 : vector<64x64xf32>
    %334 = arith.mulf %333, %328 : vector<64x64xf32>
    %335 = arith.addf %328, %334 : vector<64x64xf32>
    %cst_120 = arith.constant 0.797884583 : f32
    %336 = vector.broadcast %cst_120 : f32 to vector<64x64xf32>
    %337 = arith.mulf %336, %335 : vector<64x64xf32>
    %338 = math.tanh %337 : vector<64x64xf32>
    %cst_121 = arith.constant 1.000000e+00 : f32
    %339 = vector.broadcast %cst_121 : f32 to vector<64x64xf32>
    %340 = arith.addf %339, %338 : vector<64x64xf32>
    %341 = arith.mulf %330, %340 : vector<64x64xf32>
    %342 = vector.extract_strided_slice %307 {offsets = [0, 64], sizes = [64, 64], strides = [1, 1]} : vector<64x256xf32> to vector<64x64xf32>
    %cst_122 = arith.constant dense<0.000000e+00> : vector<64xf32>
    %343 = vector.multi_reduction <add>, %342, %cst_122 [1] : vector<64x64xf32> to vector<64xf32>
    %344 = vector.shape_cast %343 : vector<64xf32> to vector<64x1xf32>
    %cst_123 = arith.constant 6.400000e+01 : f32
    %345 = vector.broadcast %cst_123 : f32 to vector<64x1xf32>
    %346 = arith.divf %344, %345 : vector<64x1xf32>
    %347 = vector.broadcast %346 : vector<64x1xf32> to vector<64x64xf32>
    %348 = arith.subf %342, %347 : vector<64x64xf32>
    %349 = arith.mulf %348, %348 : vector<64x64xf32>
    %cst_124 = arith.constant dense<0.000000e+00> : vector<64xf32>
    %350 = vector.multi_reduction <add>, %349, %cst_124 [1] : vector<64x64xf32> to vector<64xf32>
    %351 = vector.shape_cast %350 : vector<64xf32> to vector<64x1xf32>
    %cst_125 = arith.constant 6.400000e+01 : f32
    %352 = vector.broadcast %cst_125 : f32 to vector<64x1xf32>
    %353 = arith.divf %351, %352 : vector<64x1xf32>
    %cst_126 = arith.constant 9.99999997E-7 : f32
    %354 = vector.broadcast %cst_126 : f32 to vector<64x1xf32>
    %355 = arith.addf %353, %354 : vector<64x1xf32>
    %356 = math.rsqrt %355 : vector<64x1xf32>
    %357 = vector.broadcast %356 : vector<64x1xf32> to vector<64x64xf32>
    %358 = arith.mulf %348, %357 : vector<64x64xf32>
    %359 = vector.broadcast %302 : vector<1x64xf32> to vector<64x64xf32>
    %360 = arith.mulf %358, %359 : vector<64x64xf32>
    %361 = vector.broadcast %304 : vector<1x64xf32> to vector<64x64xf32>
    %362 = arith.addf %360, %361 : vector<64x64xf32>
    %cst_127 = arith.constant 5.000000e-01 : f32
    %363 = vector.broadcast %cst_127 : f32 to vector<64x64xf32>
    %364 = arith.mulf %363, %362 : vector<64x64xf32>
    %cst_128 = arith.constant 4.471500e-02 : f32
    %365 = vector.broadcast %cst_128 : f32 to vector<64x64xf32>
    %366 = arith.mulf %365, %362 : vector<64x64xf32>
    %367 = arith.mulf %366, %362 : vector<64x64xf32>
    %368 = arith.mulf %367, %362 : vector<64x64xf32>
    %369 = arith.addf %362, %368 : vector<64x64xf32>
    %cst_129 = arith.constant 0.797884583 : f32
    %370 = vector.broadcast %cst_129 : f32 to vector<64x64xf32>
    %371 = arith.mulf %370, %369 : vector<64x64xf32>
    %372 = math.tanh %371 : vector<64x64xf32>
    %cst_130 = arith.constant 1.000000e+00 : f32
    %373 = vector.broadcast %cst_130 : f32 to vector<64x64xf32>
    %374 = arith.addf %373, %372 : vector<64x64xf32>
    %375 = arith.mulf %364, %374 : vector<64x64xf32>
    %376 = vector.extract_strided_slice %307 {offsets = [0, 128], sizes = [64, 64], strides = [1, 1]} : vector<64x256xf32> to vector<64x64xf32>
    %cst_131 = arith.constant dense<0.000000e+00> : vector<64xf32>
    %377 = vector.multi_reduction <add>, %376, %cst_131 [1] : vector<64x64xf32> to vector<64xf32>
    %378 = vector.shape_cast %377 : vector<64xf32> to vector<64x1xf32>
    %cst_132 = arith.constant 6.400000e+01 : f32
    %379 = vector.broadcast %cst_132 : f32 to vector<64x1xf32>
    %380 = arith.divf %378, %379 : vector<64x1xf32>
    %381 = vector.broadcast %380 : vector<64x1xf32> to vector<64x64xf32>
    %382 = arith.subf %376, %381 : vector<64x64xf32>
    %383 = arith.mulf %382, %382 : vector<64x64xf32>
    %cst_133 = arith.constant dense<0.000000e+00> : vector<64xf32>
    %384 = vector.multi_reduction <add>, %383, %cst_133 [1] : vector<64x64xf32> to vector<64xf32>
    %385 = vector.shape_cast %384 : vector<64xf32> to vector<64x1xf32>
    %cst_134 = arith.constant 6.400000e+01 : f32
    %386 = vector.broadcast %cst_134 : f32 to vector<64x1xf32>
    %387 = arith.divf %385, %386 : vector<64x1xf32>
    %cst_135 = arith.constant 9.99999997E-7 : f32
    %388 = vector.broadcast %cst_135 : f32 to vector<64x1xf32>
    %389 = arith.addf %387, %388 : vector<64x1xf32>
    %390 = math.rsqrt %389 : vector<64x1xf32>
    %391 = vector.broadcast %390 : vector<64x1xf32> to vector<64x64xf32>
    %392 = arith.mulf %382, %391 : vector<64x64xf32>
    %393 = vector.broadcast %302 : vector<1x64xf32> to vector<64x64xf32>
    %394 = arith.mulf %392, %393 : vector<64x64xf32>
    %395 = vector.broadcast %304 : vector<1x64xf32> to vector<64x64xf32>
    %396 = arith.addf %394, %395 : vector<64x64xf32>
    %cst_136 = arith.constant 5.000000e-01 : f32
    %397 = vector.broadcast %cst_136 : f32 to vector<64x64xf32>
    %398 = arith.mulf %397, %396 : vector<64x64xf32>
    %cst_137 = arith.constant 4.471500e-02 : f32
    %399 = vector.broadcast %cst_137 : f32 to vector<64x64xf32>
    %400 = arith.mulf %399, %396 : vector<64x64xf32>
    %401 = arith.mulf %400, %396 : vector<64x64xf32>
    %402 = arith.mulf %401, %396 : vector<64x64xf32>
    %403 = arith.addf %396, %402 : vector<64x64xf32>
    %cst_138 = arith.constant 0.797884583 : f32
    %404 = vector.broadcast %cst_138 : f32 to vector<64x64xf32>
    %405 = arith.mulf %404, %403 : vector<64x64xf32>
    %406 = math.tanh %405 : vector<64x64xf32>
    %cst_139 = arith.constant 1.000000e+00 : f32
    %407 = vector.broadcast %cst_139 : f32 to vector<64x64xf32>
    %408 = arith.addf %407, %406 : vector<64x64xf32>
    %409 = arith.mulf %398, %408 : vector<64x64xf32>
    %410 = vector.extract_strided_slice %307 {offsets = [0, 192], sizes = [64, 64], strides = [1, 1]} : vector<64x256xf32> to vector<64x64xf32>
    %cst_140 = arith.constant dense<0.000000e+00> : vector<64xf32>
    %411 = vector.multi_reduction <add>, %410, %cst_140 [1] : vector<64x64xf32> to vector<64xf32>
    %412 = vector.shape_cast %411 : vector<64xf32> to vector<64x1xf32>
    %cst_141 = arith.constant 6.400000e+01 : f32
    %413 = vector.broadcast %cst_141 : f32 to vector<64x1xf32>
    %414 = arith.divf %412, %413 : vector<64x1xf32>
    %415 = vector.broadcast %414 : vector<64x1xf32> to vector<64x64xf32>
    %416 = arith.subf %410, %415 : vector<64x64xf32>
    %417 = arith.mulf %416, %416 : vector<64x64xf32>
    %cst_142 = arith.constant dense<0.000000e+00> : vector<64xf32>
    %418 = vector.multi_reduction <add>, %417, %cst_142 [1] : vector<64x64xf32> to vector<64xf32>
    %419 = vector.shape_cast %418 : vector<64xf32> to vector<64x1xf32>
    %cst_143 = arith.constant 6.400000e+01 : f32
    %420 = vector.broadcast %cst_143 : f32 to vector<64x1xf32>
    %421 = arith.divf %419, %420 : vector<64x1xf32>
    %cst_144 = arith.constant 9.99999997E-7 : f32
    %422 = vector.broadcast %cst_144 : f32 to vector<64x1xf32>
    %423 = arith.addf %421, %422 : vector<64x1xf32>
    %424 = math.rsqrt %423 : vector<64x1xf32>
    %425 = vector.broadcast %424 : vector<64x1xf32> to vector<64x64xf32>
    %426 = arith.mulf %416, %425 : vector<64x64xf32>
    %427 = vector.broadcast %302 : vector<1x64xf32> to vector<64x64xf32>
    %428 = arith.mulf %426, %427 : vector<64x64xf32>
    %429 = vector.broadcast %304 : vector<1x64xf32> to vector<64x64xf32>
    %430 = arith.addf %428, %429 : vector<64x64xf32>
    %cst_145 = arith.constant 5.000000e-01 : f32
    %431 = vector.broadcast %cst_145 : f32 to vector<64x64xf32>
    %432 = arith.mulf %431, %430 : vector<64x64xf32>
    %cst_146 = arith.constant 4.471500e-02 : f32
    %433 = vector.broadcast %cst_146 : f32 to vector<64x64xf32>
    %434 = arith.mulf %433, %430 : vector<64x64xf32>
    %435 = arith.mulf %434, %430 : vector<64x64xf32>
    %436 = arith.mulf %435, %430 : vector<64x64xf32>
    %437 = arith.addf %430, %436 : vector<64x64xf32>
    %cst_147 = arith.constant 0.797884583 : f32
    %438 = vector.broadcast %cst_147 : f32 to vector<64x64xf32>
    %439 = arith.mulf %438, %437 : vector<64x64xf32>
    %440 = math.tanh %439 : vector<64x64xf32>
    %cst_148 = arith.constant 1.000000e+00 : f32
    %441 = vector.broadcast %cst_148 : f32 to vector<64x64xf32>
    %442 = arith.addf %441, %440 : vector<64x64xf32>
    %443 = arith.mulf %432, %442 : vector<64x64xf32>
    %c0_149 = arith.constant 0 : index
    %c0_150 = arith.constant 0 : index
    %444 = vector.load %arg1[%c0_149, %c0_150] : memref<64x64xf32, #tpu.memory_space<vmem>>, vector<64x64xf32>
    %c0_151 = arith.constant 0 : index
    %c0_152 = arith.constant 0 : index
    %445 = vector.load %arg5[%c0_151, %c0_152] : memref<64x64xf32, #tpu.memory_space<vmem>>, vector<64x64xf32>
    %c0_153 = arith.constant 0 : index
    %c0_154 = arith.constant 0 : index
    %446 = vector.load %arg6[%c0_153, %c0_154] : memref<1x64xf32, #tpu.memory_space<vmem>>, vector<1x64xf32>
    %c0_155 = arith.constant 0 : index
    %c0_156 = arith.constant 0 : index
    %447 = vector.load %arg7[%c0_155, %c0_156] : memref<1x16xf32, #tpu.memory_space<vmem>>, vector<1x16xf32>
    %c0_157 = arith.constant 0 : index
    %c0_158 = arith.constant 0 : index
    %448 = vector.load %arg8[%c0_157, %c0_158] : memref<1x16xf32, #tpu.memory_space<vmem>>, vector<1x16xf32>
    %cst_159 = arith.constant dense<0.000000e+00> : vector<64x64xf32>
    %449 = tpu.matmul %444, %445, %cst_159 {dimension_numbers = #tpu.dot_dimension_numbers<[1], [0], [0], [1], [0, 0, 1, 1], [], []>} : vector<64x64xf32>, vector<64x64xf32>, vector<64x64xf32> -> vector<64x64xf32>
    %450 = vector.broadcast %446 : vector<1x64xf32> to vector<64x64xf32>
    %451 = arith.addf %449, %450 : vector<64x64xf32>
    %452 = vector.extract_strided_slice %451 {offsets = [0, 0], sizes = [64, 16], strides = [1, 1]} : vector<64x64xf32> to vector<64x16xf32>
    %cst_160 = arith.constant dense<0.000000e+00> : vector<64xf32>
    %453 = vector.multi_reduction <add>, %452, %cst_160 [1] : vector<64x16xf32> to vector<64xf32>
    %454 = vector.shape_cast %453 : vector<64xf32> to vector<64x1xf32>
    %cst_161 = arith.constant 1.600000e+01 : f32
    %455 = vector.broadcast %cst_161 : f32 to vector<64x1xf32>
    %456 = arith.divf %454, %455 : vector<64x1xf32>
    %457 = vector.broadcast %456 : vector<64x1xf32> to vector<64x16xf32>
    %458 = arith.subf %452, %457 : vector<64x16xf32>
    %459 = arith.mulf %458, %458 : vector<64x16xf32>
    %cst_162 = arith.constant dense<0.000000e+00> : vector<64xf32>
    %460 = vector.multi_reduction <add>, %459, %cst_162 [1] : vector<64x16xf32> to vector<64xf32>
    %461 = vector.shape_cast %460 : vector<64xf32> to vector<64x1xf32>
    %cst_163 = arith.constant 1.600000e+01 : f32
    %462 = vector.broadcast %cst_163 : f32 to vector<64x1xf32>
    %463 = arith.divf %461, %462 : vector<64x1xf32>
    %cst_164 = arith.constant 9.99999997E-7 : f32
    %464 = vector.broadcast %cst_164 : f32 to vector<64x1xf32>
    %465 = arith.addf %463, %464 : vector<64x1xf32>
    %466 = math.rsqrt %465 : vector<64x1xf32>
    %467 = vector.broadcast %466 : vector<64x1xf32> to vector<64x16xf32>
    %468 = arith.mulf %458, %467 : vector<64x16xf32>
    %469 = vector.broadcast %447 : vector<1x16xf32> to vector<64x16xf32>
    %470 = arith.mulf %468, %469 : vector<64x16xf32>
    %471 = vector.broadcast %448 : vector<1x16xf32> to vector<64x16xf32>
    %472 = arith.addf %470, %471 : vector<64x16xf32>
    %cst_165 = arith.constant 5.000000e-01 : f32
    %473 = vector.broadcast %cst_165 : f32 to vector<64x16xf32>
    %474 = arith.mulf %473, %472 : vector<64x16xf32>
    %cst_166 = arith.constant 4.471500e-02 : f32
    %475 = vector.broadcast %cst_166 : f32 to vector<64x16xf32>
    %476 = arith.mulf %475, %472 : vector<64x16xf32>
    %477 = arith.mulf %476, %472 : vector<64x16xf32>
    %478 = arith.mulf %477, %472 : vector<64x16xf32>
    %479 = arith.addf %472, %478 : vector<64x16xf32>
    %cst_167 = arith.constant 0.797884583 : f32
    %480 = vector.broadcast %cst_167 : f32 to vector<64x16xf32>
    %481 = arith.mulf %480, %479 : vector<64x16xf32>
    %482 = math.tanh %481 : vector<64x16xf32>
    %cst_168 = arith.constant 1.000000e+00 : f32
    %483 = vector.broadcast %cst_168 : f32 to vector<64x16xf32>
    %484 = arith.addf %483, %482 : vector<64x16xf32>
    %485 = arith.mulf %474, %484 : vector<64x16xf32>
    %486 = vector.extract_strided_slice %451 {offsets = [0, 16], sizes = [64, 16], strides = [1, 1]} : vector<64x64xf32> to vector<64x16xf32>
    %cst_169 = arith.constant dense<0.000000e+00> : vector<64xf32>
    %487 = vector.multi_reduction <add>, %486, %cst_169 [1] : vector<64x16xf32> to vector<64xf32>
    %488 = vector.shape_cast %487 : vector<64xf32> to vector<64x1xf32>
    %cst_170 = arith.constant 1.600000e+01 : f32
    %489 = vector.broadcast %cst_170 : f32 to vector<64x1xf32>
    %490 = arith.divf %488, %489 : vector<64x1xf32>
    %491 = vector.broadcast %490 : vector<64x1xf32> to vector<64x16xf32>
    %492 = arith.subf %486, %491 : vector<64x16xf32>
    %493 = arith.mulf %492, %492 : vector<64x16xf32>
    %cst_171 = arith.constant dense<0.000000e+00> : vector<64xf32>
    %494 = vector.multi_reduction <add>, %493, %cst_171 [1] : vector<64x16xf32> to vector<64xf32>
    %495 = vector.shape_cast %494 : vector<64xf32> to vector<64x1xf32>
    %cst_172 = arith.constant 1.600000e+01 : f32
    %496 = vector.broadcast %cst_172 : f32 to vector<64x1xf32>
    %497 = arith.divf %495, %496 : vector<64x1xf32>
    %cst_173 = arith.constant 9.99999997E-7 : f32
    %498 = vector.broadcast %cst_173 : f32 to vector<64x1xf32>
    %499 = arith.addf %497, %498 : vector<64x1xf32>
    %500 = math.rsqrt %499 : vector<64x1xf32>
    %501 = vector.broadcast %500 : vector<64x1xf32> to vector<64x16xf32>
    %502 = arith.mulf %492, %501 : vector<64x16xf32>
    %503 = vector.broadcast %447 : vector<1x16xf32> to vector<64x16xf32>
    %504 = arith.mulf %502, %503 : vector<64x16xf32>
    %505 = vector.broadcast %448 : vector<1x16xf32> to vector<64x16xf32>
    %506 = arith.addf %504, %505 : vector<64x16xf32>
    %cst_174 = arith.constant 5.000000e-01 : f32
    %507 = vector.broadcast %cst_174 : f32 to vector<64x16xf32>
    %508 = arith.mulf %507, %506 : vector<64x16xf32>
    %cst_175 = arith.constant 4.471500e-02 : f32
    %509 = vector.broadcast %cst_175 : f32 to vector<64x16xf32>
    %510 = arith.mulf %509, %506 : vector<64x16xf32>
    %511 = arith.mulf %510, %506 : vector<64x16xf32>
    %512 = arith.mulf %511, %506 : vector<64x16xf32>
    %513 = arith.addf %506, %512 : vector<64x16xf32>
    %cst_176 = arith.constant 0.797884583 : f32
    %514 = vector.broadcast %cst_176 : f32 to vector<64x16xf32>
    %515 = arith.mulf %514, %513 : vector<64x16xf32>
    %516 = math.tanh %515 : vector<64x16xf32>
    %cst_177 = arith.constant 1.000000e+00 : f32
    %517 = vector.broadcast %cst_177 : f32 to vector<64x16xf32>
    %518 = arith.addf %517, %516 : vector<64x16xf32>
    %519 = arith.mulf %508, %518 : vector<64x16xf32>
    %520 = vector.extract_strided_slice %451 {offsets = [0, 32], sizes = [64, 16], strides = [1, 1]} : vector<64x64xf32> to vector<64x16xf32>
    %cst_178 = arith.constant dense<0.000000e+00> : vector<64xf32>
    %521 = vector.multi_reduction <add>, %520, %cst_178 [1] : vector<64x16xf32> to vector<64xf32>
    %522 = vector.shape_cast %521 : vector<64xf32> to vector<64x1xf32>
    %cst_179 = arith.constant 1.600000e+01 : f32
    %523 = vector.broadcast %cst_179 : f32 to vector<64x1xf32>
    %524 = arith.divf %522, %523 : vector<64x1xf32>
    %525 = vector.broadcast %524 : vector<64x1xf32> to vector<64x16xf32>
    %526 = arith.subf %520, %525 : vector<64x16xf32>
    %527 = arith.mulf %526, %526 : vector<64x16xf32>
    %cst_180 = arith.constant dense<0.000000e+00> : vector<64xf32>
    %528 = vector.multi_reduction <add>, %527, %cst_180 [1] : vector<64x16xf32> to vector<64xf32>
    %529 = vector.shape_cast %528 : vector<64xf32> to vector<64x1xf32>
    %cst_181 = arith.constant 1.600000e+01 : f32
    %530 = vector.broadcast %cst_181 : f32 to vector<64x1xf32>
    %531 = arith.divf %529, %530 : vector<64x1xf32>
    %cst_182 = arith.constant 9.99999997E-7 : f32
    %532 = vector.broadcast %cst_182 : f32 to vector<64x1xf32>
    %533 = arith.addf %531, %532 : vector<64x1xf32>
    %534 = math.rsqrt %533 : vector<64x1xf32>
    %535 = vector.broadcast %534 : vector<64x1xf32> to vector<64x16xf32>
    %536 = arith.mulf %526, %535 : vector<64x16xf32>
    %537 = vector.broadcast %447 : vector<1x16xf32> to vector<64x16xf32>
    %538 = arith.mulf %536, %537 : vector<64x16xf32>
    %539 = vector.broadcast %448 : vector<1x16xf32> to vector<64x16xf32>
    %540 = arith.addf %538, %539 : vector<64x16xf32>
    %cst_183 = arith.constant 5.000000e-01 : f32
    %541 = vector.broadcast %cst_183 : f32 to vector<64x16xf32>
    %542 = arith.mulf %541, %540 : vector<64x16xf32>
    %cst_184 = arith.constant 4.471500e-02 : f32
    %543 = vector.broadcast %cst_184 : f32 to vector<64x16xf32>
    %544 = arith.mulf %543, %540 : vector<64x16xf32>
    %545 = arith.mulf %544, %540 : vector<64x16xf32>
    %546 = arith.mulf %545, %540 : vector<64x16xf32>
    %547 = arith.addf %540, %546 : vector<64x16xf32>
    %cst_185 = arith.constant 0.797884583 : f32
    %548 = vector.broadcast %cst_185 : f32 to vector<64x16xf32>
    %549 = arith.mulf %548, %547 : vector<64x16xf32>
    %550 = math.tanh %549 : vector<64x16xf32>
    %cst_186 = arith.constant 1.000000e+00 : f32
    %551 = vector.broadcast %cst_186 : f32 to vector<64x16xf32>
    %552 = arith.addf %551, %550 : vector<64x16xf32>
    %553 = arith.mulf %542, %552 : vector<64x16xf32>
    %554 = vector.extract_strided_slice %451 {offsets = [0, 48], sizes = [64, 16], strides = [1, 1]} : vector<64x64xf32> to vector<64x16xf32>
    %cst_187 = arith.constant dense<0.000000e+00> : vector<64xf32>
    %555 = vector.multi_reduction <add>, %554, %cst_187 [1] : vector<64x16xf32> to vector<64xf32>
    %556 = vector.shape_cast %555 : vector<64xf32> to vector<64x1xf32>
    %cst_188 = arith.constant 1.600000e+01 : f32
    %557 = vector.broadcast %cst_188 : f32 to vector<64x1xf32>
    %558 = arith.divf %556, %557 : vector<64x1xf32>
    %559 = vector.broadcast %558 : vector<64x1xf32> to vector<64x16xf32>
    %560 = arith.subf %554, %559 : vector<64x16xf32>
    %561 = arith.mulf %560, %560 : vector<64x16xf32>
    %cst_189 = arith.constant dense<0.000000e+00> : vector<64xf32>
    %562 = vector.multi_reduction <add>, %561, %cst_189 [1] : vector<64x16xf32> to vector<64xf32>
    %563 = vector.shape_cast %562 : vector<64xf32> to vector<64x1xf32>
    %cst_190 = arith.constant 1.600000e+01 : f32
    %564 = vector.broadcast %cst_190 : f32 to vector<64x1xf32>
    %565 = arith.divf %563, %564 : vector<64x1xf32>
    %cst_191 = arith.constant 9.99999997E-7 : f32
    %566 = vector.broadcast %cst_191 : f32 to vector<64x1xf32>
    %567 = arith.addf %565, %566 : vector<64x1xf32>
    %568 = math.rsqrt %567 : vector<64x1xf32>
    %569 = vector.broadcast %568 : vector<64x1xf32> to vector<64x16xf32>
    %570 = arith.mulf %560, %569 : vector<64x16xf32>
    %571 = vector.broadcast %447 : vector<1x16xf32> to vector<64x16xf32>
    %572 = arith.mulf %570, %571 : vector<64x16xf32>
    %573 = vector.broadcast %448 : vector<1x16xf32> to vector<64x16xf32>
    %574 = arith.addf %572, %573 : vector<64x16xf32>
    %cst_192 = arith.constant 5.000000e-01 : f32
    %575 = vector.broadcast %cst_192 : f32 to vector<64x16xf32>
    %576 = arith.mulf %575, %574 : vector<64x16xf32>
    %cst_193 = arith.constant 4.471500e-02 : f32
    %577 = vector.broadcast %cst_193 : f32 to vector<64x16xf32>
    %578 = arith.mulf %577, %574 : vector<64x16xf32>
    %579 = arith.mulf %578, %574 : vector<64x16xf32>
    %580 = arith.mulf %579, %574 : vector<64x16xf32>
    %581 = arith.addf %574, %580 : vector<64x16xf32>
    %cst_194 = arith.constant 0.797884583 : f32
    %582 = vector.broadcast %cst_194 : f32 to vector<64x16xf32>
    %583 = arith.mulf %582, %581 : vector<64x16xf32>
    %584 = math.tanh %583 : vector<64x16xf32>
    %cst_195 = arith.constant 1.000000e+00 : f32
    %585 = vector.broadcast %cst_195 : f32 to vector<64x16xf32>
    %586 = arith.addf %585, %584 : vector<64x16xf32>
    %587 = arith.mulf %576, %586 : vector<64x16xf32>
    %588 = tpu.concatenate %45, %193, %341, %485 in 1 : vector<64x64xf32>, vector<64x64xf32>, vector<64x64xf32>, vector<64x16xf32> -> vector<64x208xf32>
    %c0_196 = arith.constant 0 : index
    %c0_197 = arith.constant 0 : index
    %589 = vector.load %arg13[%c0_196, %c0_197] : memref<208x32xf32, #tpu.memory_space<vmem>>, vector<208x32xf32>
    %cst_198 = arith.constant dense<0.000000e+00> : vector<64x32xf32>
    %590 = tpu.matmul %588, %589, %cst_198 {dimension_numbers = #tpu.dot_dimension_numbers<[1], [0], [0], [1], [0, 0, 1, 1], [], []>} : vector<64x208xf32>, vector<208x32xf32>, vector<64x32xf32> -> vector<64x32xf32>
    %c0_199 = arith.constant 0 : index
    %c0_200 = arith.constant 0 : index
    %591 = vector.load %arg14[%c0_199, %c0_200] : memref<1x32xf32, #tpu.memory_space<vmem>>, vector<1x32xf32>
    %592 = vector.broadcast %591 : vector<1x32xf32> to vector<64x32xf32>
    %593 = arith.addf %590, %592 : vector<64x32xf32>
    %594 = tpu.concatenate %79, %227, %375, %519 in 1 : vector<64x64xf32>, vector<64x64xf32>, vector<64x64xf32>, vector<64x16xf32> -> vector<64x208xf32>
    %c0_201 = arith.constant 0 : index
    %c0_202 = arith.constant 0 : index
    %595 = vector.load %arg13[%c0_201, %c0_202] : memref<208x32xf32, #tpu.memory_space<vmem>>, vector<208x32xf32>
    %cst_203 = arith.constant dense<0.000000e+00> : vector<64x32xf32>
    %596 = tpu.matmul %594, %595, %cst_203 {dimension_numbers = #tpu.dot_dimension_numbers<[1], [0], [0], [1], [0, 0, 1, 1], [], []>} : vector<64x208xf32>, vector<208x32xf32>, vector<64x32xf32> -> vector<64x32xf32>
    %c0_204 = arith.constant 0 : index
    %c0_205 = arith.constant 0 : index
    %597 = vector.load %arg14[%c0_204, %c0_205] : memref<1x32xf32, #tpu.memory_space<vmem>>, vector<1x32xf32>
    %598 = vector.broadcast %597 : vector<1x32xf32> to vector<64x32xf32>
    %599 = arith.addf %596, %598 : vector<64x32xf32>
    %600 = tpu.concatenate %113, %261, %409, %553 in 1 : vector<64x64xf32>, vector<64x64xf32>, vector<64x64xf32>, vector<64x16xf32> -> vector<64x208xf32>
    %c0_206 = arith.constant 0 : index
    %c0_207 = arith.constant 0 : index
    %601 = vector.load %arg13[%c0_206, %c0_207] : memref<208x32xf32, #tpu.memory_space<vmem>>, vector<208x32xf32>
    %cst_208 = arith.constant dense<0.000000e+00> : vector<64x32xf32>
    %602 = tpu.matmul %600, %601, %cst_208 {dimension_numbers = #tpu.dot_dimension_numbers<[1], [0], [0], [1], [0, 0, 1, 1], [], []>} : vector<64x208xf32>, vector<208x32xf32>, vector<64x32xf32> -> vector<64x32xf32>
    %c0_209 = arith.constant 0 : index
    %c0_210 = arith.constant 0 : index
    %603 = vector.load %arg14[%c0_209, %c0_210] : memref<1x32xf32, #tpu.memory_space<vmem>>, vector<1x32xf32>
    %604 = vector.broadcast %603 : vector<1x32xf32> to vector<64x32xf32>
    %605 = arith.addf %602, %604 : vector<64x32xf32>
    %606 = tpu.concatenate %147, %295, %443, %587 in 1 : vector<64x64xf32>, vector<64x64xf32>, vector<64x64xf32>, vector<64x16xf32> -> vector<64x208xf32>
    %c0_211 = arith.constant 0 : index
    %c0_212 = arith.constant 0 : index
    %607 = vector.load %arg13[%c0_211, %c0_212] : memref<208x32xf32, #tpu.memory_space<vmem>>, vector<208x32xf32>
    %cst_213 = arith.constant dense<0.000000e+00> : vector<64x32xf32>
    %608 = tpu.matmul %606, %607, %cst_213 {dimension_numbers = #tpu.dot_dimension_numbers<[1], [0], [0], [1], [0, 0, 1, 1], [], []>} : vector<64x208xf32>, vector<208x32xf32>, vector<64x32xf32> -> vector<64x32xf32>
    %c0_214 = arith.constant 0 : index
    %c0_215 = arith.constant 0 : index
    %609 = vector.load %arg14[%c0_214, %c0_215] : memref<1x32xf32, #tpu.memory_space<vmem>>, vector<1x32xf32>
    %610 = vector.broadcast %609 : vector<1x32xf32> to vector<64x32xf32>
    %611 = arith.addf %608, %610 : vector<64x32xf32>
    %612 = tpu.concatenate %593, %599, %605, %611 in 1 : vector<64x32xf32>, vector<64x32xf32>, vector<64x32xf32>, vector<64x32xf32> -> vector<64x128xf32>
    %c0_216 = arith.constant 0 : index
    %c0_217 = arith.constant 0 : index
    %613 = vector.load %arg15[%c0_216, %c0_217] : memref<64x128xf32, #tpu.memory_space<vmem>>, vector<64x128xf32>
    tpu.vector_store %arg15[%c0_216, %c0_217], %612 {strides = array<i32>} : memref<64x128xf32, #tpu.memory_space<vmem>>, vector<64x128xf32>,
    return
  }
  func.func @transform_0(%arg0: i32) -> (i32, i32) {
    %c0_i32 = arith.constant 0 : i32
    %c0_i32_0 = arith.constant 0 : i32
    return %arg0, %c0_i32 : i32, i32
  }
  func.func @transform_1(%arg0: i32) -> (i32, i32) {
    %c0_i32 = arith.constant 0 : i32
    %c0_i32_0 = arith.constant 0 : i32
    return %arg0, %c0_i32 : i32, i32
  }
  func.func @transform_2(%arg0: i32) -> (i32, i32) {
    %c0_i32 = arith.constant 0 : i32
    %c0_i32_0 = arith.constant 0 : i32
    return %arg0, %c0_i32 : i32, i32
  }
  func.func @transform_3(%arg0: i32) -> (i32, i32) {
    %c0_i32 = arith.constant 0 : i32
    %c0_i32_0 = arith.constant 0 : i32
    return %arg0, %c0_i32 : i32, i32
  }
  func.func @transform_4(%arg0: i32) -> (i32, i32) {
    %c0_i32 = arith.constant 0 : i32
    %c0_i32_0 = arith.constant 0 : i32
    %c0_i32_1 = arith.constant 0 : i32
    return %c0_i32, %c0_i32_0 : i32, i32
  }
  func.func @transform_5(%arg0: i32) -> (i32, i32) {
    %c0_i32 = arith.constant 0 : i32
    %c0_i32_0 = arith.constant 0 : i32
    %c0_i32_1 = arith.constant 0 : i32
    return %c0_i32, %c0_i32_0 : i32, i32
  }
  func.func @transform_6(%arg0: i32) -> (i32, i32) {
    %c0_i32 = arith.constant 0 : i32
    %c0_i32_0 = arith.constant 0 : i32
    %c0_i32_1 = arith.constant 0 : i32
    return %c0_i32, %c0_i32_0 : i32, i32
  }
  func.func @transform_7(%arg0: i32) -> (i32, i32) {
    %c0_i32 = arith.constant 0 : i32
    %c0_i32_0 = arith.constant 0 : i32
    %c0_i32_1 = arith.constant 0 : i32
    return %c0_i32, %c0_i32_0 : i32, i32
  }
  func.func @transform_8(%arg0: i32) -> (i32, i32, i32) {
    %c0_i32 = arith.constant 0 : i32
    %c0_i32_0 = arith.constant 0 : i32
    %c0_i32_1 = arith.constant 0 : i32
    %c0_i32_2 = arith.constant 0 : i32
    return %c0_i32, %c0_i32_0, %c0_i32_1 : i32, i32, i32
  }
  func.func @transform_9(%arg0: i32) -> (i32, i32, i32) {
    %c0_i32 = arith.constant 0 : i32
    %c0_i32_0 = arith.constant 0 : i32
    %c0_i32_1 = arith.constant 0 : i32
    %c0_i32_2 = arith.constant 0 : i32
    return %c0_i32, %c0_i32_0, %c0_i32_1 : i32, i32, i32
  }
  func.func @transform_10(%arg0: i32) -> (i32, i32, i32) {
    %c0_i32 = arith.constant 0 : i32
    %c0_i32_0 = arith.constant 0 : i32
    %c0_i32_1 = arith.constant 0 : i32
    %c0_i32_2 = arith.constant 0 : i32
    return %c0_i32, %c0_i32_0, %c0_i32_1 : i32, i32, i32
  }
  func.func @transform_11(%arg0: i32) -> (i32, i32, i32) {
    %c0_i32 = arith.constant 0 : i32
    %c0_i32_0 = arith.constant 0 : i32
    %c0_i32_1 = arith.constant 0 : i32
    %c0_i32_2 = arith.constant 0 : i32
    return %c0_i32, %c0_i32_0, %c0_i32_1 : i32, i32, i32
  }
  func.func @transform_12(%arg0: i32) -> (i32, i32) {
    %c0_i32 = arith.constant 0 : i32
    %c0_i32_0 = arith.constant 0 : i32
    %c0_i32_1 = arith.constant 0 : i32
    return %c0_i32, %c0_i32_0 : i32, i32
  }
  func.func @transform_13(%arg0: i32) -> (i32, i32) {
    %c0_i32 = arith.constant 0 : i32
    %c0_i32_0 = arith.constant 0 : i32
    %c0_i32_1 = arith.constant 0 : i32
    return %c0_i32, %c0_i32_0 : i32, i32
  }
  func.func @transform_14(%arg0: i32) -> (i32, i32) {
    %c0_i32 = arith.constant 0 : i32
    %c0_i32_0 = arith.constant 0 : i32
    return %arg0, %c0_i32 : i32, i32
  }
}

</mosaic_0001>

<bundles_post_ra>
// kernel: tile.43
= control target key start
LH: loop header
LB: loop body
LE: loop exit
PB: predicated region body
PF: predicated region fallthrough
CT: control target
= control target key end

     0   :  { %s22_s0 = inlined_call_operand.vmem [shape: f32[16], index: 0, kind: input, shape index: {}]   ;;  %s23_s1 = inlined_call_operand.vmem [shape: f32[4,16], index: 1, kind: output, shape index: {}]  }
   0x1   :  { %v4_v0 = vld [vmem:[%s22_s0] ss:$0 sm:$0xff] }
   0x2   :  { %5 = vst [vmem:[%s23_s1] sm:$0xf] %v4_v0 }

// kernel: tile.44
= control target key start
LH: loop header
LB: loop body
LE: loop exit
PB: predicated region body
PF: predicated region fallthrough
CT: control target
= control target key end

     0   :  { %s37_s8 = smov 16   ;;  %s38_s9 = smov 32   ;;  %vm7_vm0 = vcmask 130048   ;;  %vm13_vm1 = vcmask 523648   ;;  %vm19_vm2 = vcmask 392448   ;;  %vm25_vm3 = vcmask 261248   ;;  %s55_s0 = inlined_call_operand.vmem [shape: f32[4,16], index: 0, kind: input, shape index: {}]   ;;  %s56_s1 = inlined_call_operand.vmem [shape: f32[1,64], index: 1, kind: output, shape index: {}]  }
   0x1   :  { %v4_v0 = vld [vmem:[%s55_s0] sm:$0xf]  ;;  %s36_s0 = smov 48  }
   0x2   :  { %5 = vst [vmem:[#allocation1] sm:$0xf] %v4_v0 }
   0x9   :  { %v10_v1 = vld [vmem:[#allocation1 + $0x3] sm:$0x1]   ;;  %v22_v2 = vld [vmem:[#allocation1 + $0x1] sm:$0x1]   ;;  %v16_v3 = vld [vmem:[#allocation1 + $0x2] sm:$0x1]  }
   0xa   :  { %11 = vrot.lane.b32.xlu0 %v10_v1, %s36_s0  ;;  %23 = vrot.lane.b32.xlu1 %v22_v2, %s37_s8  ;;  %v6_v4 = vld [vmem:[#allocation1] sm:$0x1]  }
   0xb   :  { %8 = vst.msk [vmem:[#allocation0] sm:$0x1] %vm7_vm0, %v6_v4  }
  0x12   :  { %17 = vrot.lane.b32.xlu0 %v16_v3, %s38_s9 }
  0x7c   :  { %v12_v5 = vpop.permute.xlu0 %11   ;;  %v24_v6 = vpop.permute.xlu1 %23  }
  0x7d   :  { %14 = vst.msk [vmem:[#allocation0] sm:$0x1] %vm13_vm1, %v12_v5  }
  0x84   :  { %v18_v7 = vpop.permute.xlu0 %17  }
  0x85   :  { %20 = vst.msk [vmem:[#allocation0] sm:$0x1] %vm19_vm2, %v18_v7  }
  0x86   :  { %26 = vst.msk [vmem:[#allocation0] sm:$0x1] %vm25_vm3, %v24_v6  }
  0x8d   :  { %v29_v8 = vld [vmem:[#allocation0] sm:$0x1] }
  0x8e   :  { %32 = vst [vmem:[%s56_s1] sm:$0x1] %v29_v8 }

// kernel: tile.48
= control target key start
LH: loop header
LB: loop body
LE: loop exit
PB: predicated region body
PF: predicated region fallthrough
CT: control target
= control target key end

     0   :  { %s22_s0 = inlined_call_operand.vmem [shape: f32[64], index: 0, kind: input, shape index: {}]   ;;  %s23_s1 = inlined_call_operand.vmem [shape: f32[4,64], index: 1, kind: output, shape index: {}]  }
   0x1   :  { %v4_v0 = vld [vmem:[%s22_s0] ss:$0 sm:$0xff] }
   0x2   :  { %5 = vst [vmem:[%s23_s1] sm:$0xf] %v4_v0 }

// kernel: tile.57
= control target key start
LH: loop header
LB: loop body
LE: loop exit
PB: predicated region body
PF: predicated region fallthrough
CT: control target
= control target key end

     0   :  { %s6_s8 = smov 3  ;;  %vm8_vm0 = vcmask 523264   ;;  %s31_s9 = smov 64   ;;  %vm15_vm1 = vcmask 1048064   ;;  %s51_s0 = inlined_call_operand.vmem [shape: f32[4,64], index: 0, kind: input, shape index: {}]   ;;  %s52_s1 = inlined_call_operand.vmem [shape: f32[1,1,256], index: 1, kind: output, shape index: {}]  }
   0x1   :  { %v4_v0 = vld [vmem:[%s51_s0] sm:$0xf]  ;;  %s11_s0 = smov 3 }
   0x2   :  { %5 = vst [vmem:[#allocation1] sm:$0xf] %v4_v0 }
   0x9   :  { %v12_v1 = vld [vmem:[#allocation1 + $0x1] ss:$2 sm:%s11_s0]   ;;  %v7_v2 = vld [vmem:[#allocation1] ss:$2 sm:%s6_s8]  }
   0xa   :  { %13 = vrot.lane.b32.xlu0 %v12_v1, %s31_s9  ;;  %9 = vst.msk [vmem:[#allocation0] ss:$8 sm:$0x3] %vm8_vm0, %v7_v2  }
  0x7c   :  { %v14_v3 = vpop.permute.xlu0 %13  }
  0x7d   :  { %16 = vst.msk [vmem:[#allocation0] ss:$8 sm:$0x3] %vm15_vm1, %v14_v3  }
  0x84   :  { %v19_v4 = vld [vmem:[#allocation0] sm:$0x1]  ;;  %v24_v5 = vld [vmem:[#allocation0 + $0x8] sm:$0x1] }
  0x85   :  { %22 = vst [vmem:[%s52_s1] sm:$0x1] %v19_v4 }
  0x86   :  { %29 = vst [vmem:[%s52_s1 + $0x1] sm:$0x1] %v24_v5 }

</bundles_post_ra>
